<compile_context>
chip_gen: v5e
topology: v5e:2x2
jax: 0.10.0
libtpu: 0.0.40
codegen_flags: <defaults>
</compile_context>

<pallas_src>
import jax
import jax.numpy as jnp
from jax.experimental import pallas as pl
from jax.experimental.pallas import tpu as pltpu


_SMALL_C_THRESHOLD = 8  # C < 8 -> VPU rank-1 FMA path; C >= 8 -> MXU path


def _pa_kernel_small(x_ref, w_ref, b_ref, o_ref):
    # x_ref/o_ref: VMEM (1, C, T); w_ref: VMEM (C, C) f32; b_ref: VMEM (C, 1) f32
    xf = x_ref[0].astype(jnp.float32)                 # (C, T), cast once
    wf = w_ref[...]                                   # (C, C) f32
    C = xf.shape[0]
    # y = W @ x + b  built from C full-block rank-1 FMAs: (C,1) * (1,T) -> (C,T)
    y = wf[:, 0:1] * xf[0:1, :]
    for ic in range(1, C):
        y = y + wf[:, ic:ic + 1] * xf[ic:ic + 1, :]
    y = y + b_ref[...]                                # (C,1) broadcast over lanes
    o_ref[0] = (xf * jax.nn.sigmoid(y)).astype(o_ref.dtype)


def _pa_kernel_matmul(x_ref, w_ref, b_ref, o_ref):
    # x_ref/o_ref: VMEM (1, C, T) in the input dtype; w_ref: VMEM (C, C) same
    # dtype as x (bf16 stays bf16 -> native MXU path); b_ref: VMEM (C, 1) f32.
    x = x_ref[0]                                      # (C, T), native dtype
    y = jnp.dot(w_ref[...], x, preferred_element_type=jnp.float32)
    y = y + b_ref[...]                                # (C,1) f32 broadcast
    sig = jax.nn.sigmoid(y)                           # f32 (EUP)
    o_ref[0] = (x * sig.astype(o_ref.dtype)).astype(o_ref.dtype)


def _choose_tile(hw, c, itemsize, n_batch):
    # ~2 MiB input blocks: with in/out double-buffering plus f32 intermediates
    # (y, sigmoid) this stays well under the 48 MiB scoped limit on every gen
    # (v7x has 64 MiB physical VMEM).
    budget_bytes = 2 * 1024 * 1024
    tile = budget_bytes // max(1, c * itemsize)
    tile = max(128, (tile // 128) * 128)              # lane-aligned
    if hw <= tile:
        tile = hw                                     # full-dim block is legal
    # Megacore coverage (v7x: 2 TCs/chip): make sure there are >= 2 grid steps.
    if n_batch * pl.cdiv(hw, tile) < 2 and hw >= 256:
        half = ((pl.cdiv(hw, 2) + 127) // 128) * 128  # multiple of 128
        tile = min(tile, max(128, half))
    return tile


def pa_forward(x_nchw, weight, bias, donate_x: bool = False):
    """x_nchw: (N, C, H, W); weight: (C, C, 1, 1); bias: (C,)"""
    N, C, H, W = x_nchw.shape
    assert weight.shape[0] == weight.shape[1] == C and weight.shape[2:] == (1, 1)
    assert bias.shape == (C,)

    HW = H * W
    x = x_nchw.reshape(N, C, HW)                      # free reshape
    itemsize = jnp.dtype(x.dtype).itemsize
    tile = _choose_tile(HW, C, itemsize, N)
    grid = (N, pl.cdiv(HW, tile))

    w2d = weight[:, :, 0, 0]                          # (C_out, C_in); y = W @ x
    b_col = bias.astype(jnp.float32).reshape(C, 1)    # single wrapper-side cast

    if C < _SMALL_C_THRESHOLD:
        kernel = _pa_kernel_small
        w_arg = w2d.astype(jnp.float32)
    else:
        kernel = _pa_kernel_matmul
        w_arg = w2d.astype(x.dtype)                   # bf16 in -> bf16 MXU path

    out = pl.pallas_call(
        kernel,
        out_shape=jax.ShapeDtypeStruct((N, C, HW), x.dtype),
        grid=grid,
        in_specs=[
            pl.BlockSpec((1, C, tile), lambda n, t: (n, 0, t)),  # x tile
            pl.BlockSpec((C, C), lambda n, t: (0, 0)),           # weights (resident)
            pl.BlockSpec((C, 1), lambda n, t: (0, 0)),           # bias (resident)
        ],
        out_specs=pl.BlockSpec((1, C, tile), lambda n, t: (n, 0, t)),
        compiler_params=pltpu.CompilerParams(
            dimension_semantics=("parallel", "parallel"),
            vmem_limit_bytes=48 * 1024 * 1024,
        ),
        input_output_aliases=({0: 0} if donate_x else {}),
    )(x, w_arg, b_col)

    return out.reshape(N, C, H, W)


def pa_reference(x_nchw, weight, bias):
    # Pure-JAX reference of the PyTorch module.
    w = weight[:, :, 0, 0]                            # (C_out, C_in)
    y = jnp.einsum('nchw,oc->nohw', x_nchw, w) + bias[None, :, None, None]
    return x_nchw * jax.nn.sigmoid(y)


if __name__ == "__main__":
    key = jax.random.PRNGKey(0)
    k_x, k_w, k_b = jax.random.split(key, 3)

    N, C, H, W = 2, 4, 16, 16          # nf = 4
    x = jax.random.normal(k_x, (N, C, H, W), dtype=jnp.float32)
    weight = jax.random.normal(k_w, (C, C, 1, 1), dtype=jnp.float32) * 0.1
    bias = jax.random.normal(k_b, (C,), dtype=jnp.float32) * 0.1

    out = pa_forward(x, weight, bias)
    out = jax.block_until_ready(out)

    ref = pa_reference(x, weight, bias)
    assert out.shape == x.shape
    assert jnp.allclose(out, ref, atol=1e-5, rtol=1e-5), "mismatch vs reference"

    # Also exercise the MXU path (C >= 8) for robustness.
    C2 = 16
    x2 = jax.random.normal(k_x, (1, C2, 32, 32), dtype=jnp.float32)
    w2 = jax.random.normal(k_w, (C2, C2, 1, 1), dtype=jnp.float32) * 0.1
    b2 = jax.random.normal(k_b, (C2,), dtype=jnp.float32) * 0.1
    out2 = jax.block_until_ready(pa_forward(x2, w2, b2))
    assert jnp.allclose(out2, pa_reference(x2, w2, b2), atol=1e-5, rtol=1e-5)

    print("KERNEL_OK")
</pallas_src>

<mosaic_0001>
module attributes {stable_mosaic.version = 11 : i64} {
  func.func @_pa_kernel_small(%arg0: i32, %arg1: i32, %arg2: memref<1x4x256xf32, #tpu.memory_space<vmem>>, %arg3: memref<4x4xf32, #tpu.memory_space<vmem>>, %arg4: memref<4x1xf32, #tpu.memory_space<vmem>>, %arg5: memref<1x4x256xf32, #tpu.memory_space<vmem>>) attributes {dimension_semantics = [#tpu.dimension_semantics<parallel>, #tpu.dimension_semantics<parallel>], iteration_bounds = array<i64: 2, 1>, scalar_prefetch = 0 : i64, scratch_operands = 0 : i64, tpu.core_type = #tpu.core_type<tc>, window_params = [{transform_indices = @transform_0, window_bounds = array<i64: 1, 4, 256>}, {pipeline_mode = #tpu.pipeline_mode<synchronous>, transform_indices = @transform_1, window_bounds = array<i64: 4, 4>}, {pipeline_mode = #tpu.pipeline_mode<synchronous>, transform_indices = @transform_2, window_bounds = array<i64: 4, 1>}, {transform_indices = @transform_3, window_bounds = array<i64: 1, 4, 256>}]} {
    %c0 = arith.constant 0 : index
    %c0_0 = arith.constant 0 : index
    %c0_1 = arith.constant 0 : index
    %0 = vector.load %arg2[%c0, %c0_0, %c0_1] : memref<1x4x256xf32, #tpu.memory_space<vmem>>, vector<1x4x256xf32>
    %1 = vector.shape_cast %0 : vector<1x4x256xf32> to vector<4x256xf32>
    %c0_2 = arith.constant 0 : index
    %c0_3 = arith.constant 0 : index
    %2 = vector.load %arg3[%c0_2, %c0_3] : memref<4x4xf32, #tpu.memory_space<vmem>>, vector<4x4xf32>
    %3 = vector.extract_strided_slice %2 {offsets = [0, 0], sizes = [4, 1], strides = [1, 1]} : vector<4x4xf32> to vector<4x1xf32>
    %4 = vector.extract_strided_slice %1 {offsets = [0, 0], sizes = [1, 256], strides = [1, 1]} : vector<4x256xf32> to vector<1x256xf32>
    %5 = vector.broadcast %3 : vector<4x1xf32> to vector<4x256xf32>
    %6 = vector.broadcast %4 : vector<1x256xf32> to vector<4x256xf32>
    %7 = arith.mulf %5, %6 : vector<4x256xf32>
    %8 = vector.extract_strided_slice %2 {offsets = [0, 1], sizes = [4, 1], strides = [1, 1]} : vector<4x4xf32> to vector<4x1xf32>
    %9 = vector.extract_strided_slice %1 {offsets = [1, 0], sizes = [1, 256], strides = [1, 1]} : vector<4x256xf32> to vector<1x256xf32>
    %10 = vector.broadcast %8 : vector<4x1xf32> to vector<4x256xf32>
    %11 = vector.broadcast %9 : vector<1x256xf32> to vector<4x256xf32>
    %12 = arith.mulf %10, %11 : vector<4x256xf32>
    %13 = arith.addf %7, %12 : vector<4x256xf32>
    %14 = vector.extract_strided_slice %2 {offsets = [0, 2], sizes = [4, 1], strides = [1, 1]} : vector<4x4xf32> to vector<4x1xf32>
    %15 = vector.extract_strided_slice %1 {offsets = [2, 0], sizes = [1, 256], strides = [1, 1]} : vector<4x256xf32> to vector<1x256xf32>
    %16 = vector.broadcast %14 : vector<4x1xf32> to vector<4x256xf32>
    %17 = vector.broadcast %15 : vector<1x256xf32> to vector<4x256xf32>
    %18 = arith.mulf %16, %17 : vector<4x256xf32>
    %19 = arith.addf %13, %18 : vector<4x256xf32>
    %20 = vector.extract_strided_slice %2 {offsets = [0, 3], sizes = [4, 1], strides = [1, 1]} : vector<4x4xf32> to vector<4x1xf32>
    %21 = vector.extract_strided_slice %1 {offsets = [3, 0], sizes = [1, 256], strides = [1, 1]} : vector<4x256xf32> to vector<1x256xf32>
    %22 = vector.broadcast %20 : vector<4x1xf32> to vector<4x256xf32>
    %23 = vector.broadcast %21 : vector<1x256xf32> to vector<4x256xf32>
    %24 = arith.mulf %22, %23 : vector<4x256xf32>
    %25 = arith.addf %19, %24 : vector<4x256xf32>
    %c0_4 = arith.constant 0 : index
    %c0_5 = arith.constant 0 : index
    %26 = vector.load %arg4[%c0_4, %c0_5] : memref<4x1xf32, #tpu.memory_space<vmem>>, vector<4x1xf32>
    %27 = vector.broadcast %26 : vector<4x1xf32> to vector<4x256xf32>
    %28 = arith.addf %25, %27 : vector<4x256xf32>
    %29 = arith.negf %28 : vector<4x256xf32>
    %30 = math.exp %29 : vector<4x256xf32>
    %cst = arith.constant 1.000000e+00 : f32
    %31 = vector.broadcast %cst : f32 to vector<4x256xf32>
    %32 = arith.addf %31, %30 : vector<4x256xf32>
    %33 = arith.divf %31, %32 : vector<4x256xf32>
    %34 = arith.mulf %1, %33 : vector<4x256xf32>
    %c0_6 = arith.constant 0 : index
    %c0_7 = arith.constant 0 : index
    %c0_8 = arith.constant 0 : index
    %35 = vector.load %arg5[%c0_6, %c0_7, %c0_8] : memref<1x4x256xf32, #tpu.memory_space<vmem>>, vector<1x4x256xf32>
    %36 = vector.shape_cast %35 : vector<1x4x256xf32> to vector<4x256xf32>
    %37 = vector.shape_cast %34 : vector<4x256xf32> to vector<1x4x256xf32>
    tpu.vector_store %arg5[%c0_6, %c0_7, %c0_8], %37 {strides = array<i32>} : memref<1x4x256xf32, #tpu.memory_space<vmem>>, vector<1x4x256xf32>,
    return
  }
  func.func @transform_0(%arg0: i32, %arg1: i32) -> (i32, i32, i32) {
    %c0_i32 = arith.constant 0 : i32
    %c0_i32_0 = arith.constant 0 : i32
    return %arg0, %c0_i32, %arg1 : i32, i32, i32
  }
  func.func @transform_1(%arg0: i32, %arg1: i32) -> (i32, i32) {
    %c0_i32 = arith.constant 0 : i32
    %c0_i32_0 = arith.constant 0 : i32
    %c0_i32_1 = arith.constant 0 : i32
    return %c0_i32, %c0_i32_0 : i32, i32
  }
  func.func @transform_2(%arg0: i32, %arg1: i32) -> (i32, i32) {
    %c0_i32 = arith.constant 0 : i32
    %c0_i32_0 = arith.constant 0 : i32
    %c0_i32_1 = arith.constant 0 : i32
    return %c0_i32, %c0_i32_0 : i32, i32
  }
  func.func @transform_3(%arg0: i32, %arg1: i32) -> (i32, i32, i32) {
    %c0_i32 = arith.constant 0 : i32
    %c0_i32_0 = arith.constant 0 : i32
    return %arg0, %c0_i32, %arg1 : i32, i32, i32
  }
}

</mosaic_0001>

<bundles_post_ra>
// kernel: tpu_custom_call.1
= control target key start
LH: loop header
LB: loop body
LE: loop exit
PB: predicated region body
PF: predicated region fallthrough
CT: control target
= control target key end

     0   :  { %8 = vsyncpa [#allocation3], 0  ;;  %s808_s0 = inlined_call_operand.hbm [shape: f32[2,4,256], index: 0, kind: input, shape index: {}]   ;;  %s809_s1 = inlined_call_operand.vmem [shape: f32[4,4], index: 1, kind: input, shape index: {}]   ;;  %s810_s2 = inlined_call_operand.vmem [shape: f32[4,1], index: 2, kind: input, shape index: {}]   ;;  %s811_s3 = inlined_call_operand.hbm [shape: f32[2,4,256], index: 3, kind: output, shape index: {}]  }
   0x1   :  { %10 = vsyncpa [#allocation3 + $0x1], 0 }
   0x2   :  { %11 = vsyncpa [#allocation4], 0 }
   0x3   :  { %13 = vsyncpa [#allocation4 + $0x1], 0  ;;  %s661_s12 = smov 0   ;;  %s663_s13 = smov 0  }
   0x4   :  { %s665_s14 = smov 0   ;;  %s667_s15 = smov 0  }
   0x5   :  { %s669_s16 = smov 0   ;;  %s671_s17 = smov 0  }
   0x6 LB: > { %s424_s18 = sadd.s32 4294967295, %s635_s17   ;;  %s425_s19 = sadd.s32 4294967294, %s635_s17   ;;  %s635_s17 = sphi %s671_s17, %s19_s17   ;;  %s631_s16 = sphi %s669_s16, %s822_s16   ;;  %s627_s15 = sphi %s667_s15, %s821_s15   ;;  %s623_s14 = sphi %s665_s14, %s820_s14   ;;  %s619_s13 = sphi %s663_s13, %s819_s13   ;;  %s615_s12 = sphi %s661_s12, %s818_s12  }
   0x7   : > { %s31_s20 = sadd.s32 1, %s631_s16  ;;  %s40_s21 = sadd.s32 1, %s623_s14 }
   0x8   : > { %p33_p0 = scmp.ge.s32.totalorder %s31_s20, 2  ;;  %p47_p1 = scmp.ne.s32.totalorder %s623_s14, %s619_s13 }
   0x9   : > { %p48_p2 = scmp.eq.s32.totalorder %s635_s17, 0  ;;  %p53_p3 = scmp.ne.s32.totalorder %s619_s13, %s615_s12 }
   0xa   : > { %s824_s20 = smov (%p33_p0, %s31_s20), 0  ;;  %p54_p5 = scmp.eq.s32.totalorder %s424_s18, 0 }
   0xb   : > { %p702_p4 = por %p48_p2, %p47_p1  ;;  %s35_s23 = ssub.s32 %s631_s16, %s824_s20 }
   0xc   : > { %p121_p6 = scmp.eq.s32.totalorder %s424_s18, 1  ;;  %p38_p7 = scmp.eq.s32.totalorder %s35_s23, 0 }
   0xd   : > { %p708_p8 = por %p54_p5, %p53_p3  ;;  %p127_p10 = scmp.eq.s32.totalorder %s425_s19, 1 }
   0xe   : > { %p712_p9 = por %p121_p6, %p47_p1  ;;  %p427_p12 = scmp.ge.s32.totalorder %s635_s17, 2 }
   0xf   : > { %s717_s26 = scalar_select %p38_p7, %s623_s14, %s40_s21  }
  0x10   : > { %p719_p11 = por %p127_p10, %p53_p3  ;;  %p455_p13 = scmp.lt.s32.totalorder %s635_s17, 2 }
  0x11   : > { %s153_s28 = sand.u32 1, %s623_s14   ;;  %s441_s30 = sshll.u32 %s631_s16, 3 }
  0x12   : > { %s428_s29 = sshll.u32 %s153_s28, 3  ;;  %s164_s6 = scalar_lea.hbm %s808_s0, %s441_s30 }
  0x13   : > { %s157_s7 = scalar_lea.vmem [#allocation2], %s428_s29  ;;  %s166_s9 = sshll.u32 %s164_s6, 4  ;;  %s167_s9 = int_to_ptr.hbm [resolvable:$true] %s166_s9 }
  0x14   : > { %s168_s8 = sshll.u32 %s157_s7, 4  ;;  %p448_p0 = pnand %p455_p13, %p702_p4  ;;  %s169_s8 = int_to_ptr.vmem [resolvable:$true] %s168_s8 }
  0x15   : > { %p431_p1 = scmp.ge.s32.totalorder %s635_s17, 1  ;;  %p173_p2 = scmp.lt.s32.totalorder %s635_s17, 3 }
  0x16   : > { %s154_s10 = scalar_lea.sflag [#allocation3], %s153_s28 }
  0x17   : > { %450 = dma.hbm_to_vmem [thread:$0]  (!%p448_p0), %s167_s9, 128, %s169_s8, %s154_s10  }
  0x18   : > { %p174_p3 = pnand %p431_p1, %p173_p2 }
  0x19   : > { %s735_s11 = sand.u32 (!%p174_p3), 1, %s619_s13  }
  0x1a   : > { %177 = sbr.rel (%p174_p3) target bundleno = 205 (0xcd), region = 32  ;;  %s432_s18 = sshll.u32 (!%p174_p3), %s735_s11, 3 }
  0x1b   : > { %s180_s19 = scalar_lea.sflag (!%p174_p3), [#allocation3], %s735_s11  ;;  %s183_s21 = scalar_lea.vmem (!%p174_p3), [#allocation2], %s432_s18 }
  0x1f   : > { %606 = dma.done.wait (%p708_p8), %s180_s19, 128  }
  0x20   : > { %608 = vsyncadd (%p708_p8), %s180_s19, 4294967168  ;;  %v637_v0 = vmov 0   ;;  %v638_v1 = vmov 2   ;;  %v210_v2 = vld [vmem:[%s809_s1] sm:$0xf]  ;;  %v639_v4 = vmov 1  }
  0x21   : > { %509 = vset.pattern.permute.xlu0 %v637_v0  ;;  %511 = vset.pattern.permute.xlu1 %v638_v1  ;;  %v267_v3 = vld [vmem:[%s810_s2] sm:$0xf]  ;;  %v640_v5 = vmov 3   ;;  %s442_s24 = sshll.u32 %s627_s15, 3  ;;  %vm316_vm7 = vcmask 1043456   ;;  %s206_s15 = scalar_lea.vmem [#allocation5], %s432_s18 }
  0x22   : > { %513 = vset.pattern.permute.xlu2 %v637_v0  ;;  %213 = vperm.xlu0 %509, %v210_v2   ;;  %v751_v6 = vld [vmem:[%s183_s21] sm:$0xff]  ;;  %s335_s5 = scalar_lea.hbm %s811_s3, %s442_s24  ;;  %s337_s6 = sshll.u32 %s206_s15, 4  ;;  %s338_s6 = int_to_ptr.vmem [resolvable:$true] %s337_s6 }
  0x23   : > { %240 = vperm.xlu1 %511, %v210_v2   ;;  %270 = vperm.xlu2 %513, %v267_v3   ;;  %v217_v9 = vperm.slane %v751_v6, 0  ;;  %v218_v10 = vperm.slane %v751_v6, 4  ;;  %v229_v11 = vperm.slane %v751_v6, 1  ;;  %v230_v12 = vperm.slane %v751_v6, 5  ;;  %s339_s7 = sshll.u32 %s335_s5, 4  ;;  %s322_s8 = scalar_lea.sflag [#allocation4], %s735_s11  ;;  %s340_s7 = int_to_ptr.hbm [resolvable:$true] %s339_s7 }
  0x24   : > { %v243_v13 = vperm.slane %v751_v6, 2  ;;  %v244_v14 = vperm.slane %v751_v6, 6  ;;  %v257_v15 = vperm.slane %v751_v6, 3  ;;  %v258_v16 = vperm.slane %v751_v6, 7  ;;  %s567_s9 = sshra.s32 %s340_s7, 4  ;;  %s573_s18 = scalar_lea.hbm %s811_s3, 16  ;;  %s568_s9 = int_to_ptr.hbm [resolvable:$true] %s567_s9 }
  0x25   : > { %v221_v17 = vperm.slane %v217_v9, 0  ;;  %v222_v18 = vperm.slane %v218_v10, 0  ;;  %v233_v19 = vperm.slane %v229_v11, 1  ;;  %v234_v20 = vperm.slane %v230_v12, 1  ;;  %s569_s10 = scalar_lea.hbm %s568_s9, 8  ;;  %p574_p7 = scmp.lt.s32.totalorder %s568_s9, %s811_s3 }
  0x26   : > { %v247_v21 = vperm.slane %v243_v13, 2  ;;  %v248_v22 = vperm.slane %v244_v14, 2  ;;  %v261_v23 = vperm.slane %v257_v15, 3  ;;  %v262_v24 = vperm.slane %v258_v16, 3  ;;  %p570_p4 = scmp.ne.s32.totalorder %s568_s9, %s569_s10  ;;  %p575_p8 = scmp.lt.s32.totalorder %s573_s18, %s569_s10 }
  0x28   : > { %p571_p5 = pnand %p570_p4, %p712_p9  ;;  %p576_p10 = por %p575_p8, %p574_p7 }
  0x2a   : > { %510 = vset.pattern.permute.xlu0 %v639_v4  ;;  %p572_p6 = pneg %p571_p5 }
  0x2b   : > { %512 = vset.pattern.permute.xlu1 %v640_v5  ;;  %226 = vperm.xlu0 %510, %v210_v2  }
  0x2c   : > { %254 = vperm.xlu1 %512, %v210_v2   ;;  %p577_p13 = pnand %p576_p10, %p572_p6 }
  0x33   : > { %514 = vset.pattern.permute.xlu0 %v637_v0 }
  0x7d   : > { %v271_v39 = vpop.permute.xlu2 %270 }
  0x94   : > { %v214_v7 = vpop.permute.xlu0 %213 }
  0x95   : > { %v241_v8 = vpop.permute.xlu1 %240  ;;  %v223_v27 = vmul.f32 %v221_v17, %v214_v7  ;;  %v224_v28 = vmul.f32 %v222_v18, %v214_v7 }
  0x96   : > { %v249_v31 = vmul.f32 %v247_v21, %v241_v8  ;;  %v250_v32 = vmul.f32 %v248_v22, %v241_v8 }
  0x9d   : > { %v227_v25 = vpop.permute.xlu0 %226 }
  0x9e   : > { %v255_v26 = vpop.permute.xlu1 %254  ;;  %v235_v29 = vmul.f32 %v233_v19, %v227_v25  ;;  %v236_v30 = vmul.f32 %v234_v20, %v227_v25 }
  0x9f   : > { %v263_v35 = vmul.f32 %v261_v23, %v255_v26  ;;  %v264_v36 = vmul.f32 %v262_v24, %v255_v26 }
  0xa0   : > { %v237_v33 = vadd.f32 %v235_v29, %v223_v27  ;;  %v238_v34 = vadd.f32 %v236_v30, %v224_v28 }
  0xa2   : > { %v251_v37 = vadd.f32 %v249_v31, %v237_v33  ;;  %v252_v38 = vadd.f32 %v250_v32, %v238_v34 }
  0xa4   : > { %v265_v40 = vadd.f32 %v263_v35, %v251_v37  ;;  %v266_v41 = vadd.f32 %v264_v36, %v252_v38 }
  0xa6   : > { %v273_v42 = vadd.f32 %v271_v39, %v265_v40  ;;  %v274_v43 = vadd.f32 %v271_v39, %v266_v41 }
  0xa8   : > { %v434_v44 = vmul.f32 -1.442695, %v273_v42  ;;  %v435_v45 = vmul.f32 -1.442695, %v274_v43 }
  0xaa   : > { %515 = vpow2.f32 %v434_v44 }
  0xab   : > { %517 = vpow2.f32 %v435_v45 }
  0xb0   : > { %v516_v46 = vpop.eup %515 }
  0xb1   : > { %v518_v47 = vpop.eup %517  ;;  %v281_v48 = vadd.f32 1.0, %v516_v46 }
  0xb2   : > { %v282_v49 = vadd.f32 1.0, %v518_v47 }
  0xb3   : > { %519 = vrcp.f32 %v281_v48  ;;  %vm288_vm2 = vweird.f32 %v281_v48  ;;  %v294_v60 = vand.u32 2147483648, %v281_v48  ;;  %v292_v63 = vand.u32 2147483647, %v281_v48 }
  0xb4   : > { %521 = vrcp.f32 %v282_v49  ;;  %v309_v57 = vand.u32 2147483648, %v282_v49  ;;  %v307_v59 = vand.u32 2147483647, %v282_v49  ;;  %vm303_vm4 = vweird.f32 %v282_v49 }
  0xb5   : > { %v295_v4 = vor.u32 1.1754944e-38, %v294_v60  ;;  %vm293_vm8 = vcmp.eq.f32.partialorder %v292_v63, 8.507059e+37 }
  0xb6   : > { %v310_v1 = vor.u32 1.1754944e-38, %v309_v57  ;;  %vm308_vm6 = vcmp.eq.f32.partialorder %v307_v59, 8.507059e+37 }
  0xb9   : > { %v520_v50 = vpop.eup %519 }
  0xba   : > { %v522_v51 = vpop.eup %521  ;;  %v284_v52 = vmul.f32 %v520_v50, %v281_v48  ;;  %vm289_vm0 = vweird.f32 %v520_v50 }
  0xbb   : > { %v299_v53 = vmul.f32 %v522_v51, %v282_v49  ;;  %vm304_vm1 = vweird.f32 %v522_v51  ;;  %vm762_vm3 = vmor %vm288_vm2, %vm289_vm0 }
  0xbc   : > { %v285_v54 = vsub.f32 1.0, %v284_v52  ;;  %vm305_vm5 = vmor %vm303_vm4, %vm304_vm1 }
  0xbd   : > { %v300_v55 = vsub.f32 1.0, %v299_v53 }
  0xbe   : > { %v286_v56 = vmul.f32 %v520_v50, %v285_v54 }
  0xbf   : > { %v301_v58 = vmul.f32 %v522_v51, %v300_v55 }
  0xc0   : > { %v287_v61 = vadd.f32 %v520_v50, %v286_v56 }
  0xc1   : > { %v302_v0 = vadd.f32 %v522_v51, %v301_v58 }
  0xc2   : > { %v291_v2 = vsel %vm762_vm3, %v520_v50, %v287_v61 }
  0xc3   : > { %v306_v3 = vsel %vm305_vm5, %v522_v51, %v302_v0  ;;  %v296_v8 = vsel %vm293_vm8, %v295_v4, %v291_v2 }
  0xc4   : > { %v311_v5 = vsel %vm308_vm6, %v310_v1, %v306_v3 }
  0xc5   : > { %v315_v7 = vrot.slane %v311_v5, 4 }
  0xc7   : > { %v317_v9 = vsel %vm316_vm7, %v296_v8, %v315_v7 }
  0xc8   : > { %v319_v10 = vmul.f32 %v317_v9, %v751_v6 }
  0xca   : > { %320 = vst [vmem:[%s206_s15] sm:$0xff] %v319_v10 }
  0xcb   : > { %580 = shalt.err (!%p577_p13)
}
  0xcc   : > { %445 = dma.vmem_to_hbm [thread:$0]  (%p712_p9), %s338_s6, 128, %s340_s7, %s322_s8  }
  0xcd PF: > { %s351_s11 = sand.u32 1, %s615_s12   ;;  %p452_p0 = pnand %p427_p12, %p719_p11 }
  0xce   : > { %s352_s28 = scalar_lea.sflag [#allocation4], %s351_s11 }
  0xcf   : > { %p453_p1 = pneg %p452_p0 }
  0xd1   : > { %610 = dma.done.wait (%p453_p1), %s352_s28, 128  }
  0xd2   : > { %612 = vsyncadd (%p453_p1), %s352_s28, 4294967168  ;;  %s19_s17 = sadd.s32 1, %s635_s17   ;;  %s818_s12 = smov %s619_s13 }
  0xd3   : > { %p16_p2 = scmp.ge.s32.totalorder %s19_s17, 4   ;;  %s819_s13 = smov %s623_s14 }
  0xd4   : > { %s820_s14 = smov %s717_s26  ;;  %s821_s15 = smov %s631_s16 }
  0xd5   : > { %s822_s16 = smov %s824_s20  ;;  %18 = sbr.rel (!%p16_p2) target bundleno = 6 (0x6), region = 77 }
  0xda   :  { %358 = vsyncpa [#allocation3], 1 }
  0xdb   :  { %360 = vsyncpa [#allocation3 + $0x1], 1 }
  0xdc   :  { %361 = vsyncpa [#allocation4], 1 }
  0xdd   :  { %363 = vsyncpa [#allocation4 + $0x1], 1 }

</bundles_post_ra>
